<compile_context>
chip_gen: v7x
topology: tpu7x:2x2x1
jax: 0.10.0
libtpu: 0.0.40
codegen_flags: <defaults>
</compile_context>

<pallas_src>
import math

import jax
import jax.numpy as jnp
from jax.experimental import pallas as pl
from jax.experimental.pallas import tpu as pltpu

_INV_SQRT2 = 1.0 / math.sqrt(2.0)


def _round_up(x, m):
    return ((x + m - 1) // m) * m


def _cdiv(a, b):
    return -(-a // b)


def mlp_kernel(x_ref, gamma_ref, beta_ref, w1_ref, b1_ref, w2_ref, b2_ref,
               o_ref, xn_ref, acc_ref):
    """Grid = (row tiles ["parallel"], H chunks ["arbitrary"])."""
    k = pl.program_id(1)

    @pl.when(k == 0)
    def _():
        # LayerNorm over last dim in f32 (eps matches torch default 1e-5).
        x = x_ref[...].astype(jnp.float32)                 # (TM, D)
        mean = jnp.mean(x, axis=-1, keepdims=True)
        xc = x - mean
        var = jnp.mean(xc * xc, axis=-1, keepdims=True)
        xn = xc * jax.lax.rsqrt(var + 1e-5)
        xn = xn * gamma_ref[...] + beta_ref[...]           # (1, D) broadcasts
        xn_ref[...] = xn.astype(jnp.bfloat16)              # cached across H chunks
        acc_ref[...] = jnp.zeros_like(acc_ref)

    # fc1 chunk: bf16 MXU operands, f32 accumulation; exact (erf) GELU in f32.
    h = jnp.dot(xn_ref[...], w1_ref[...],
                preferred_element_type=jnp.float32) + b1_ref[...]
    h = 0.5 * h * (1.0 + jax.lax.erf(h * _INV_SQRT2))

    # fc2 chunk: accumulate into the resident f32 (TM, D) accumulator.
    acc_ref[...] += jnp.dot(h.astype(jnp.bfloat16), w2_ref[...],
                            preferred_element_type=jnp.float32)

    @pl.when(k == pl.num_programs(1) - 1)
    def _():
        # bias2 + residual (re-read from the resident x tile) + store.
        y = acc_ref[...] + b2_ref[...] + x_ref[...].astype(jnp.float32)
        o_ref[...] = y.astype(o_ref.dtype)


def prepare_params(gamma, beta, w1, b1, w2, b2):
    """One-time parameter prep (hoisted out of the per-call hot path).

    Pads the hidden dim to a multiple of 128 (exact: padded hidden units are
    GELU(0 + 0) = 0 and multiply zero rows of w2) and casts the big matrices
    to bf16. Weights stored as (in, out) so the kernel computes x @ W.
    """
    D, H = w1.shape
    assert w2.shape == (H, D), "use_residual=True path requires out_dim == in_dim"
    h_pad = _round_up(H, 128)
    b1 = jnp.reshape(b1, (1, H))
    if h_pad != H:
        w1 = jnp.pad(w1, ((0, 0), (0, h_pad - H)))
        b1 = jnp.pad(b1, ((0, 0), (0, h_pad - H)))
        w2 = jnp.pad(w2, ((0, h_pad - H), (0, 0)))
    return {
        "gamma": jnp.reshape(gamma, (1, D)).astype(jnp.float32),
        "beta": jnp.reshape(beta, (1, D)).astype(jnp.float32),
        "w1": w1.astype(jnp.bfloat16),
        "b1": b1.astype(jnp.float32),
        "w2": w2.astype(jnp.bfloat16),
        "b2": jnp.reshape(b2, (1, D)).astype(jnp.float32),
    }


def _vmem_capacity_bytes():
    try:
        cap = getattr(pltpu.get_tpu_info(), "vmem_capacity_bytes", None)
        if cap:
            return int(cap)
    except Exception:
        pass
    return 64 * 1024 * 1024   # conservative default (v7x per-TC VMEM)


def _pick_hc(h_pad, target):
    """Largest multiple of 128 that divides h_pad and is <= target."""
    q = h_pad // 128
    best = 128
    for d in range(1, q + 1):
        if q % d == 0 and 128 * d <= target:
            best = 128 * d
    return best


def _select_tiles(M, D, h_pad, itemsize, vmem_cap):
    # Usable scoped-VMEM budget: ~13/16 of physical (≈104 MiB on 128 MiB
    # v5e/v6e, ≈52 MiB on v7x's 64 MiB per-TC VMEM).
    vmem_budget = (vmem_cap * 13) // 16
    tm_target = 512 if vmem_cap >= 96 * 1024 * 1024 else 256

    # Balance row tiles to minimize padding for ragged M (multiple of 8).
    n_row_tiles = max(1, _cdiv(M, tm_target))
    tm = min(_round_up(_cdiv(M, n_row_tiles), 8), tm_target, _round_up(M, 8))

    # Keep the "parallel" row axis at >= 2 steps so both v7x cores get work.
    if _round_up(M, tm) // tm < 2 and M > 8:
        tm = max(8, _round_up(_cdiv(tm, 2), 8))

    hc = _pick_hc(h_pad, min(h_pad, 2048))

    def est_bytes(tm_, hc_):
        return (2 * tm_ * D * itemsize            # x tile (double-buffered)
                + 2 * tm_ * D * itemsize          # out tile (double-buffered)
                + 2 * 2 * (2 * D * hc_)           # w1+w2 bf16 chunks (double-buffered)
                + 2 * 2 * hc_ * 4 + 3 * D * 4     # b1 chunks + gamma/beta/b2
                + tm_ * D * (2 + 4)               # xn (bf16) + acc (f32) scratch
                + tm_ * hc_ * 4)                  # (tm, hc) f32 fc1/GELU intermediate

    # Shrink the H chunk first, then the row tile, until the estimate
    # (+20% headroom) fits the budget.
    while est_bytes(tm, hc) * 6 // 5 > vmem_budget:
        if hc > 128:
            hc = _pick_hc(h_pad, hc // 2)
        elif tm > 8:
            tm = max(8, _round_up(tm // 2, 8))
        else:
            break

    est = est_bytes(tm, hc)
    need = _round_up(est * 6 // 5, 1 << 20)
    vmem_limit = int(min(max(need, 32 * 1024 * 1024), vmem_budget))
    if need > vmem_budget:                        # last resort; compile will verify
        vmem_limit = int(min(need, vmem_cap))
    return tm, hc, vmem_limit


def mlp_pallas(x, params):
    """x: (..., D). params: output of prepare_params (bf16 padded weights)."""
    gamma, beta = params["gamma"], params["beta"]
    w1, b1, w2, b2 = params["w1"], params["b1"], params["w2"], params["b2"]

    orig_shape = x.shape
    D = orig_shape[-1]
    h_pad = w1.shape[1]
    assert w1.shape[0] == D and w2.shape == (h_pad, D)

    x2 = x.reshape(-1, D)
    M = x2.shape[0]
    itemsize = x.dtype.itemsize

    tm, hc, vmem_limit = _select_tiles(M, D, h_pad, itemsize, _vmem_capacity_bytes())

    m_pad = _round_up(M, tm)
    if m_pad != M:
        x2 = jnp.pad(x2, ((0, m_pad - M), (0, 0)))

    grid = (m_pad // tm, h_pad // hc)

    flops = 2 * m_pad * (D * h_pad + h_pad * D)
    bytes_accessed = (2 * m_pad * D * itemsize
                      + 2 * (D * h_pad + h_pad * D)        # bf16 weights
                      + (2 * D + h_pad + D) * 4)           # ln params + biases
    cost = pl.CostEstimate(flops=flops, transcendentals=m_pad * h_pad,
                           bytes_accessed=bytes_accessed)

    out = pl.pallas_call(
        mlp_kernel,
        out_shape=jax.ShapeDtypeStruct((m_pad, D), x.dtype),
        grid=grid,
        in_specs=[
            pl.BlockSpec((tm, D), lambda i, k: (i, 0)),    # x (resident across k)
            pl.BlockSpec((1, D), lambda i, k: (0, 0)),     # gamma
            pl.BlockSpec((1, D), lambda i, k: (0, 0)),     # beta
            pl.BlockSpec((D, hc), lambda i, k: (0, k)),    # w1 chunk
            pl.BlockSpec((1, hc), lambda i, k: (0, k)),    # b1 chunk
            pl.BlockSpec((hc, D), lambda i, k: (k, 0)),    # w2 chunk
            pl.BlockSpec((1, D), lambda i, k: (0, 0)),     # b2
        ],
        out_specs=pl.BlockSpec((tm, D), lambda i, k: (i, 0)),
        scratch_shapes=[
            pltpu.VMEM((tm, D), jnp.bfloat16),             # xn cache
            pltpu.VMEM((tm, D), jnp.float32),              # fc2 accumulator
        ],
        compiler_params=pltpu.CompilerParams(
            dimension_semantics=("parallel", "arbitrary"),
            vmem_limit_bytes=vmem_limit),
        cost_estimate=cost,
    )(x2, gamma, beta, w1, b1, w2, b2)

    if m_pad != M:
        out = out[:M]
    return out.reshape(orig_shape)


def init_params(key, in_dim, hidden_dim, out_dim):
    """Deterministic init mirroring the module's parameter shapes.
    nn.Linear weight is (out, in); we store the transpose (in, out) for x @ W."""
    k1, k2, k3, k4 = jax.random.split(key, 4)
    bound1 = 1.0 / math.sqrt(in_dim)
    bound2 = 1.0 / math.sqrt(hidden_dim)
    gamma = jnp.ones((1, in_dim), jnp.float32)
    beta = jnp.zeros((1, in_dim), jnp.float32)
    w1 = jax.random.uniform(k1, (in_dim, hidden_dim), jnp.float32, -bound1, bound1)
    b1 = jax.random.uniform(k2, (1, hidden_dim), jnp.float32, -bound1, bound1)
    w2 = jax.random.uniform(k3, (hidden_dim, out_dim), jnp.float32, -bound2, bound2)
    b2 = jax.random.uniform(k4, (1, out_dim), jnp.float32, -bound2, bound2)
    return gamma, beta, w1, b1, w2, b2


def mlp_reference(x, gamma, beta, w1, b1, w2, b2):
    residual = x
    mean = jnp.mean(x, axis=-1, keepdims=True)
    var = jnp.mean((x - mean) ** 2, axis=-1, keepdims=True)
    xn = (x - mean) * jax.lax.rsqrt(var + 1e-5) * gamma[0] + beta[0]
    h = xn @ w1 + b1[0]
    h = 0.5 * h * (1.0 + jax.lax.erf(h / math.sqrt(2.0)))
    y = h @ w2 + b2[0]
    return y + residual


if __name__ == "__main__":
    key = jax.random.PRNGKey(0)
    kx, kp = jax.random.split(key)

    # Small but lane-dense shapes (feature dims are multiples of 128).
    batch, seq, in_dim, hidden_dim = 2, 8, 128, 256
    out_dim = in_dim   # use_residual=True => out_dim == in_dim

    x = jax.random.normal(kx, (batch, seq, in_dim), jnp.float32)
    raw_params = init_params(kp, in_dim, hidden_dim, out_dim)

    # One-time param prep (bf16 cast + hidden-dim padding) outside the hot path.
    prepared = jax.block_until_ready(prepare_params(*raw_params))

    y = jax.block_until_ready(mlp_pallas(x, prepared))
    y_ref = mlp_reference(x, *raw_params)

    assert y.shape == x.shape
    # bf16 MXU operands (with f32 accumulation) vs. a pure-f32 reference:
    # use a correspondingly looser tolerance.
    max_err = jnp.max(jnp.abs(y - y_ref))
    assert jnp.allclose(y, y_ref, atol=5e-2, rtol=5e-2), \
        f"mismatch vs reference (max abs err {max_err})"

    print("KERNEL_OK")
</pallas_src>

<mosaic_0001>
module attributes {stable_mosaic.version = 11 : i64} {
  func.func @mlp_kernel(%arg0: i32, %arg1: i32, %arg2: memref<8x128xf32, #tpu.memory_space<vmem>>, %arg3: memref<1x128xf32, #tpu.memory_space<vmem>>, %arg4: memref<1x128xf32, #tpu.memory_space<vmem>>, %arg5: memref<128x256xbf16, #tpu.memory_space<vmem>>, %arg6: memref<1x256xf32, #tpu.memory_space<vmem>>, %arg7: memref<256x128xbf16, #tpu.memory_space<vmem>>, %arg8: memref<1x128xf32, #tpu.memory_space<vmem>>, %arg9: memref<8x128xf32, #tpu.memory_space<vmem>>, %arg10: memref<8x128xbf16, #tpu.memory_space<vmem>>, %arg11: memref<8x128xf32, #tpu.memory_space<vmem>>) attributes {dimension_semantics = [#tpu.dimension_semantics<parallel>, #tpu.dimension_semantics<arbitrary>], iteration_bounds = array<i64: 2, 1>, scalar_prefetch = 0 : i64, scratch_operands = 2 : i64, tpu.core_type = #tpu.core_type<tc>, window_params = [{transform_indices = @transform_0, window_bounds = array<i64: 8, 128>}, {pipeline_mode = #tpu.pipeline_mode<synchronous>, transform_indices = @transform_1, window_bounds = array<i64: 1, 128>}, {pipeline_mode = #tpu.pipeline_mode<synchronous>, transform_indices = @transform_2, window_bounds = array<i64: 1, 128>}, {transform_indices = @transform_3, window_bounds = array<i64: 128, 256>}, {transform_indices = @transform_4, window_bounds = array<i64: 1, 256>}, {transform_indices = @transform_5, window_bounds = array<i64: 256, 128>}, {pipeline_mode = #tpu.pipeline_mode<synchronous>, transform_indices = @transform_6, window_bounds = array<i64: 1, 128>}, {transform_indices = @transform_7, window_bounds = array<i64: 8, 128>}]} {
    %c0_i32 = arith.constant 0 : i32
    %0 = arith.cmpi eq, %arg1, %c0_i32 : i32
    %1 = arith.extui %0 : i1 to i32
    %c0_i32_0 = arith.constant 0 : i32
    %2 = arith.cmpi ne, %1, %c0_i32_0 : i32
    scf.if %2 {
      %c0_18 = arith.constant 0 : index
      %c0_19 = arith.constant 0 : index
      %26 = vector.load %arg2[%c0_18, %c0_19] : memref<8x128xf32, #tpu.memory_space<vmem>>, vector<8x128xf32>
      %cst_20 = arith.constant dense<0.000000e+00> : vector<8xf32>
      %27 = vector.multi_reduction <add>, %26, %cst_20 [1] : vector<8x128xf32> to vector<8xf32>
      %28 = vector.shape_cast %27 : vector<8xf32> to vector<8x1xf32>
      %cst_21 = arith.constant 1.280000e+02 : f32
      %29 = vector.broadcast %cst_21 : f32 to vector<8x1xf32>
      %30 = arith.divf %28, %29 : vector<8x1xf32>
      %31 = vector.broadcast %30 : vector<8x1xf32> to vector<8x128xf32>
      %32 = arith.subf %26, %31 : vector<8x128xf32>
      %33 = arith.mulf %32, %32 : vector<8x128xf32>
      %cst_22 = arith.constant dense<0.000000e+00> : vector<8xf32>
      %34 = vector.multi_reduction <add>, %33, %cst_22 [1] : vector<8x128xf32> to vector<8xf32>
      %35 = vector.shape_cast %34 : vector<8xf32> to vector<8x1xf32>
      %cst_23 = arith.constant 1.280000e+02 : f32
      %36 = vector.broadcast %cst_23 : f32 to vector<8x1xf32>
      %37 = arith.divf %35, %36 : vector<8x1xf32>
      %cst_24 = arith.constant 9.99999974E-6 : f32
      %38 = vector.broadcast %cst_24 : f32 to vector<8x1xf32>
      %39 = arith.addf %37, %38 : vector<8x1xf32>
      %40 = math.rsqrt %39 : vector<8x1xf32>
      %41 = vector.broadcast %40 : vector<8x1xf32> to vector<8x128xf32>
      %42 = arith.mulf %32, %41 : vector<8x128xf32>
      %c0_25 = arith.constant 0 : index
      %c0_26 = arith.constant 0 : index
      %43 = vector.load %arg3[%c0_25, %c0_26] : memref<1x128xf32, #tpu.memory_space<vmem>>, vector<1x128xf32>
      %44 = vector.broadcast %43 : vector<1x128xf32> to vector<8x128xf32>
      %45 = arith.mulf %42, %44 : vector<8x128xf32>
      %c0_27 = arith.constant 0 : index
      %c0_28 = arith.constant 0 : index
      %46 = vector.load %arg4[%c0_27, %c0_28] : memref<1x128xf32, #tpu.memory_space<vmem>>, vector<1x128xf32>
      %47 = vector.broadcast %46 : vector<1x128xf32> to vector<8x128xf32>
      %48 = arith.addf %45, %47 : vector<8x128xf32>
      %49 = arith.truncf %48 : vector<8x128xf32> to vector<8x128xbf16>
      %c0_29 = arith.constant 0 : index
      %c0_30 = arith.constant 0 : index
      %50 = vector.load %arg10[%c0_29, %c0_30] : memref<8x128xbf16, #tpu.memory_space<vmem>>, vector<8x128xbf16>
      tpu.vector_store %arg10[%c0_29, %c0_30], %49 {strides = array<i32>} : memref<8x128xbf16, #tpu.memory_space<vmem>>, vector<8x128xbf16>,
      %cst_31 = arith.constant 0.000000e+00 : f32
      %51 = vector.broadcast %cst_31 : f32 to vector<8x128xf32>
      %c0_32 = arith.constant 0 : index
      %c0_33 = arith.constant 0 : index
      %52 = vector.load %arg11[%c0_32, %c0_33] : memref<8x128xf32, #tpu.memory_space<vmem>>, vector<8x128xf32>
      tpu.vector_store %arg11[%c0_32, %c0_33], %51 {strides = array<i32>} : memref<8x128xf32, #tpu.memory_space<vmem>>, vector<8x128xf32>,
    } else {
    }
    %c0 = arith.constant 0 : index
    %c0_1 = arith.constant 0 : index
    %3 = vector.load %arg10[%c0, %c0_1] : memref<8x128xbf16, #tpu.memory_space<vmem>>, vector<8x128xbf16>
    %c0_2 = arith.constant 0 : index
    %c0_3 = arith.constant 0 : index
    %4 = vector.load %arg5[%c0_2, %c0_3] : memref<128x256xbf16, #tpu.memory_space<vmem>>, vector<128x256xbf16>
    %cst = arith.constant dense<0.000000e+00> : vector<8x256xf32>
    %5 = tpu.matmul %3, %4, %cst {dimension_numbers = #tpu.dot_dimension_numbers<[1], [0], [0], [1], [0, 0, 1, 1], [], []>} : vector<8x128xbf16>, vector<128x256xbf16>, vector<8x256xf32> -> vector<8x256xf32>
    %c0_4 = arith.constant 0 : index
    %c0_5 = arith.constant 0 : index
    %6 = vector.load %arg6[%c0_4, %c0_5] : memref<1x256xf32, #tpu.memory_space<vmem>>, vector<1x256xf32>
    %7 = vector.broadcast %6 : vector<1x256xf32> to vector<8x256xf32>
    %8 = arith.addf %5, %7 : vector<8x256xf32>
    %cst_6 = arith.constant 5.000000e-01 : f32
    %9 = vector.broadcast %cst_6 : f32 to vector<8x256xf32>
    %10 = arith.mulf %9, %8 : vector<8x256xf32>
    %cst_7 = arith.constant 0.707106769 : f32
    %11 = vector.broadcast %cst_7 : f32 to vector<8x256xf32>
    %12 = arith.mulf %8, %11 : vector<8x256xf32>
    %13 = math.erf %12 : vector<8x256xf32>
    %cst_8 = arith.constant 1.000000e+00 : f32
    %14 = vector.broadcast %cst_8 : f32 to vector<8x256xf32>
    %15 = arith.addf %14, %13 : vector<8x256xf32>
    %16 = arith.mulf %10, %15 : vector<8x256xf32>
    %c0_9 = arith.constant 0 : index
    %c0_10 = arith.constant 0 : index
    %17 = vector.load %arg11[%c0_9, %c0_10] : memref<8x128xf32, #tpu.memory_space<vmem>>, vector<8x128xf32>
    %18 = arith.truncf %16 : vector<8x256xf32> to vector<8x256xbf16>
    %c0_11 = arith.constant 0 : index
    %c0_12 = arith.constant 0 : index
    %19 = vector.load %arg7[%c0_11, %c0_12] : memref<256x128xbf16, #tpu.memory_space<vmem>>, vector<256x128xbf16>
    %cst_13 = arith.constant dense<0.000000e+00> : vector<8x128xf32>
    %20 = tpu.matmul %18, %19, %cst_13 {dimension_numbers = #tpu.dot_dimension_numbers<[1], [0], [0], [1], [0, 0, 1, 1], [], []>} : vector<8x256xbf16>, vector<256x128xbf16>, vector<8x128xf32> -> vector<8x128xf32>
    %21 = arith.addf %17, %20 : vector<8x128xf32>
    %c0_14 = arith.constant 0 : index
    %c0_15 = arith.constant 0 : index
    %22 = vector.load %arg11[%c0_14, %c0_15] : memref<8x128xf32, #tpu.memory_space<vmem>>, vector<8x128xf32>
    tpu.vector_store %arg11[%c0_14, %c0_15], %21 {strides = array<i32>} : memref<8x128xf32, #tpu.memory_space<vmem>>, vector<8x128xf32>,
    %c0_i32_16 = arith.constant 0 : i32
    %23 = arith.cmpi eq, %arg1, %c0_i32_16 : i32
    %24 = arith.extui %23 : i1 to i32
    %c0_i32_17 = arith.constant 0 : i32
    %25 = arith.cmpi ne, %24, %c0_i32_17 : i32
    scf.if %25 {
      %c0_18 = arith.constant 0 : index
      %c0_19 = arith.constant 0 : index
      %26 = vector.load %arg11[%c0_18, %c0_19] : memref<8x128xf32, #tpu.memory_space<vmem>>, vector<8x128xf32>
      %c0_20 = arith.constant 0 : index
      %c0_21 = arith.constant 0 : index
      %27 = vector.load %arg8[%c0_20, %c0_21] : memref<1x128xf32, #tpu.memory_space<vmem>>, vector<1x128xf32>
      %28 = vector.broadcast %27 : vector<1x128xf32> to vector<8x128xf32>
      %29 = arith.addf %26, %28 : vector<8x128xf32>
      %c0_22 = arith.constant 0 : index
      %c0_23 = arith.constant 0 : index
      %30 = vector.load %arg2[%c0_22, %c0_23] : memref<8x128xf32, #tpu.memory_space<vmem>>, vector<8x128xf32>
      %31 = arith.addf %29, %30 : vector<8x128xf32>
      %c0_24 = arith.constant 0 : index
      %c0_25 = arith.constant 0 : index
      %32 = vector.load %arg9[%c0_24, %c0_25] : memref<8x128xf32, #tpu.memory_space<vmem>>, vector<8x128xf32>
      tpu.vector_store %arg9[%c0_24, %c0_25], %31 {strides = array<i32>} : memref<8x128xf32, #tpu.memory_space<vmem>>, vector<8x128xf32>,
    } else {
    }
    return
  }
  func.func @transform_0(%arg0: i32, %arg1: i32) -> (i32, i32) {
    %c0_i32 = arith.constant 0 : i32
    %c0_i32_0 = arith.constant 0 : i32
    return %arg0, %c0_i32 : i32, i32
  }
  func.func @transform_1(%arg0: i32, %arg1: i32) -> (i32, i32) {
    %c0_i32 = arith.constant 0 : i32
    %c0_i32_0 = arith.constant 0 : i32
    %c0_i32_1 = arith.constant 0 : i32
    return %c0_i32, %c0_i32_0 : i32, i32
  }
  func.func @transform_2(%arg0: i32, %arg1: i32) -> (i32, i32) {
    %c0_i32 = arith.constant 0 : i32
    %c0_i32_0 = arith.constant 0 : i32
    %c0_i32_1 = arith.constant 0 : i32
    return %c0_i32, %c0_i32_0 : i32, i32
  }
  func.func @transform_3(%arg0: i32, %arg1: i32) -> (i32, i32) {
    %c0_i32 = arith.constant 0 : i32
    %c0_i32_0 = arith.constant 0 : i32
    return %c0_i32, %arg1 : i32, i32
  }
  func.func @transform_4(%arg0: i32, %arg1: i32) -> (i32, i32) {
    %c0_i32 = arith.constant 0 : i32
    %c0_i32_0 = arith.constant 0 : i32
    return %c0_i32, %arg1 : i32, i32
  }
  func.func @transform_5(%arg0: i32, %arg1: i32) -> (i32, i32) {
    %c0_i32 = arith.constant 0 : i32
    %c0_i32_0 = arith.constant 0 : i32
    return %arg1, %c0_i32 : i32, i32
  }
  func.func @transform_6(%arg0: i32, %arg1: i32) -> (i32, i32) {
    %c0_i32 = arith.constant 0 : i32
    %c0_i32_0 = arith.constant 0 : i32
    %c0_i32_1 = arith.constant 0 : i32
    return %c0_i32, %c0_i32_0 : i32, i32
  }
  func.func @transform_7(%arg0: i32, %arg1: i32) -> (i32, i32) {
    %c0_i32 = arith.constant 0 : i32
    %c0_i32_0 = arith.constant 0 : i32
    return %arg0, %c0_i32 : i32, i32
  }
}

</mosaic_0001>

<bundles_post_ra>
// kernel: tpu_custom_call.1
= control target key start
LH: loop header
LB: loop body
LE: loop exit
PB: predicated region body
PF: predicated region fallthrough
CT: control target
= control target key end

     0   :  { %12 = vsyncpa [#allocation5], 0  ;;  %s1587_s0 = inlined_call_operand.hbm [shape: f32[16,128], index: 0, kind: input, shape index: {}]   ;;  %s1588_s1 = inlined_call_operand.vmem [shape: f32[1,128], index: 1, kind: input, shape index: {}]   ;;  %s1589_s2 = inlined_call_operand.vmem [shape: f32[1,128], index: 2, kind: input, shape index: {}]   ;;  %s1590_s3 = inlined_call_operand.hbm [shape: bf16[128,256], index: 3, kind: input, shape index: {}]   ;;  %s1591_s4 = inlined_call_operand.vmem [shape: f32[1,256], index: 4, kind: input, shape index: {}]   ;;  %s1592_s5 = inlined_call_operand.hbm [shape: bf16[256,128], index: 5, kind: input, shape index: {}]   ;;  %s1593_s6 = inlined_call_operand.vmem [shape: f32[1,128], index: 6, kind: input, shape index: {}]   ;;  %s1594_s7 = inlined_call_operand.hbm [shape: f32[16,128], index: 7, kind: output, shape index: {}]  }
   0x1   :  { %14 = vsyncpa [#allocation5 + $0x1], 0 }
   0x2   :  { %15 = vsyncpa [#allocation8], 0 }
   0x3   :  { %16 = vsyncpa [#allocation6], 0 }
   0x4   :  { %18 = vsyncpa [#allocation6 + $0x1], 0  ;;  %s1316_s24 = smov 0   ;;  %s1318_s25 = smov 0  }
   0x5   :  { %s1320_s26 = smov 0   ;;  %s1322_s27 = smov 0  }
   0x6   :  { %s1324_s28 = smov 0   ;;  %s1326_s29 = smov 0  }
   0x7 LB: > { %1601 = sst [smem:[#allocation14_spill]] %s1245_s24  ;;  %s884_s30 = sadd.s32 4294967295, %s1265_s29   ;;  %s1265_s29 = sphi %s1326_s29, %s24_s29   ;;  %s1261_s28 = sphi %s1324_s28, %s1622_s28   ;;  %s1257_s27 = sphi %s1322_s27, %s1621_s27   ;;  %s1253_s26 = sphi %s1320_s26, %s1620_s26   ;;  %s1249_s25 = sphi %s1318_s25, %s1619_s25   ;;  %s1245_s24 = sphi %s1316_s24, %s1618_s24  }
   0x8   : > { %s885_s8 = sadd.s32 4294967294, %s1265_s29   ;;  %p56_p0 = scmp.ne.s32.totalorder %s1249_s25, %s1245_s24 }
   0x9   : > { %p1350_p1 = scmp.eq.s32.totalorder %s884_s30, 0  ;;  %p1354_p2 = scmp.eq.s32.totalorder %s884_s30, 1 }
   0xa   : > { %p227_p3 = scmp.eq.s32.totalorder %s885_s8, 1  ;;  %p886_p5 = scmp.ge.s32.totalorder %s1265_s29, 1 }
   0xb   : > { %s1602_s9 = scalar_select %p1350_p1, 1, 0 }
   0xc   : > { %p1360_p4 = por %p1350_p1, %p56_p0  ;;  %p1365_p6 = por %p227_p3, %p56_p0 }
   0xd   : > { %p234_p7 = scmp.lt.s32.totalorder %s1265_s29, 3  ;;  %s1267_s14 = smov [#allocation7]  }
   0xe   : > { %s1604_s11 = scalar_select %p1360_p4, 1, 0 }
   0xf   : > { %s1605_s12 = scalar_select %p1365_p6, 1, 0 }
  0x10   : > { %p1370_p8 = pnand %p886_p5, %p234_p7  ;;  %s255_s15 = sshll.u32 %s1267_s14, 4  ;;  %s1374_s15 = int_to_ptr.vmem [resolvable:$true] %s255_s15 }
  0x11   : > { %1606 = sst [smem:[#allocation15_spill]] %s1605_s12  ;;  %s1268_s17 = smov [#allocation9]  }
  0x12   : > { %p971_p9 = pneg %p1370_p8  ;;  %s279_s18 = sshll.u32 %s1268_s17, 4  ;;  %s1385_s18 = int_to_ptr.vmem [resolvable:$true] %s279_s18 }
  0x13   : > { %s1093_s21 = scalar_lea.hbm %s1590_s3, 2048 }
  0x14   : > { %p1381_p11 = pnand %p971_p9, %p1350_p1  ;;  %p1094_p12 = scmp.ne.s32.totalorder %s1590_s3, %s1093_s21 }
  0x15   : > { %p1100_p5 = scmp.lt.u32.totalorder %s1093_s21, %s1590_s3 }
  0x16   : > { %p1095_p13 = pneg %p1381_p11 }
  0x18   : > { %p1096_p0 = pnand %p1095_p13, %p1094_p12 }
  0x1a   : > { %p1097_p3 = pneg %p1096_p0 }
  0x1c   : > { %p1102_p7 = pnand %p1100_p5, %p1097_p3 }
  0x1e   : > { %1105 = shalt.err (!%p1102_p7)
}
  0x1f   : > { %s1106_s14 = scalar_lea.vmem %s1374_s15, 2048  ;;  %p1114_p1 = scmp.lt.s32.totalorder %s1374_s15, %s1374_s15 }
  0x20   : > { %p1107_p9 = scmp.ne.s32.totalorder %s1374_s15, %s1106_s14  ;;  %p1115_p12 = scmp.lt.s32.totalorder %s1106_s14, %s1106_s14 }
  0x22   : > { %p1109_p10 = pnand %p1107_p9, %p1095_p13  ;;  %p1116_p0 = por %p1115_p12, %p1114_p1 }
  0x24   : > { %p1110_p6 = pneg %p1109_p10 }
  0x26   : > { %p1117_p4 = pnand %p1116_p0, %p1110_p6 }
  0x28   : > { %1120 = shalt.err (!%p1117_p4)
}
  0x29   : > { %s1269_s17 = smov 128   ;;  %s1270_s19 = smov 8  }
  0x2a   : > { %974 = dma.hbm_to_vmem [thread:$0]  (!%p1381_p11), %s1590_s3, 2048, %s1374_s15, [#allocation8], %s1269_s17, %s1269_s17, %s1270_s19  }
  0x2b   : > { %s1121_s30 = scalar_lea.hbm %s1592_s5, 2048 }
  0x2c   : > { %p1122_p1 = scmp.ne.s32.totalorder %s1592_s5, %s1121_s30  ;;  %p1128_p10 = scmp.lt.u32.totalorder %s1121_s30, %s1592_s5 }
  0x2e   : > { %p1124_p4 = pnand %p1122_p1, %p1095_p13 }
  0x30   : > { %p1125_p6 = pneg %p1124_p4 }
  0x32   : > { %p1130_p3 = pnand %p1128_p10, %p1125_p6 }
  0x34   : > { %1133 = shalt.err (!%p1130_p3)
}
  0x35   : > { %s1134_s15 = scalar_lea.vmem %s1385_s18, 2048  ;;  %p1142_p12 = scmp.lt.s32.totalorder %s1385_s18, %s1385_s18 }
  0x36   : > { %p1135_p5 = scmp.ne.s32.totalorder %s1385_s18, %s1134_s15  ;;  %p1143_p0 = scmp.lt.s32.totalorder %s1134_s15, %s1134_s15 }
  0x38   : > { %p1137_p7 = pnand %p1135_p5, %p1095_p13  ;;  %p1144_p1 = por %p1143_p0, %p1142_p12 }
  0x3a   : > { %p1138_p9 = pneg %p1137_p7 }
  0x3c   : > { %p1145_p4 = pnand %p1144_p1, %p1138_p9 }
  0x3e   : > { %1148 = shalt.err (!%p1145_p4)
}
  0x3f   : > { %s1271_s24 = smov 64   ;;  %s1272_s12 = smov 4  }
  0x40   : > { %977 = dma.hbm_to_vmem [thread:$0]  (!%p1381_p11), %s1592_s5, 2048, %s1385_s18, [#allocation8], %s1271_s24, %s1271_s24, %s1272_s12  }
  0x41   : > { %s36_s20 = sadd.s32 1, %s1261_s28  ;;  %s43_s21 = sadd.s32 1, %s1253_s26 }
  0x42   : > { %p38_p13 = scmp.ge.s32.totalorder %s36_s20, 2  ;;  %p50_p6 = scmp.ne.s32.totalorder %s1253_s26, %s1249_s25 }
  0x43   : > { %p51_p10 = scmp.eq.s32.totalorder %s1265_s29, 0  ;;  %p988_p3 = scmp.lt.s32.totalorder %s1265_s29, 2 }
  0x44   : > { %s1624_s20 = smov (%p38_p13, %s36_s20), 0  ;;  %p1449_p7 = por %p1354_p2, %p50_p6 }
  0x45   : > { %p52_p5 = por %p51_p10, %p50_p6  ;;  %s40_s16 = ssub.s32 %s1261_s28, %s1624_s20 }
  0x46   : > { %s1609_s22 = scalar_select %p1449_p7, 1, 0 }
  0x47   : > { %s296_s23 = sand.u32 1, %s1253_s26   ;;  %p41_p9 = scmp.eq.s32.totalorder %s40_s16, 0 }
  0x48   : > { %s891_s18 = sshll.u32 %s296_s23, 3  ;;  %s892_s30 = sshll.u32 %s1261_s28, 7 }
  0x49   : > { %s1458_s8 = scalar_select %p41_p9, %s1253_s26, %s43_s21  }
  0x4a   : > { %s1463_s24 = scalar_lea.hbm %s1587_s0, %s892_s30  ;;  %s300_s10 = scalar_lea.vmem [#allocation4], %s891_s18 }
  0x4b   : > { %s307_s12 = sshll.u32 %s300_s10, 4  ;;  %p1467_p2 = pnand %p988_p3, %p52_p5  ;;  %s1471_s12 = int_to_ptr.vmem [resolvable:$true] %s307_s12 }
  0x4c   : > { %s297_s19 = scalar_lea.sflag [#allocation5], %s296_s23  ;;  %s1149_s21 = scalar_lea.hbm %s1463_s24, 128 }
  0x4d   : > { %p1150_p11 = scmp.ne.s32.totalorder %s1463_s24, %s1149_s21  ;;  %p1151_p12 = pneg %p1467_p2 }
  0x4e   : > { %s1154_s30 = scalar_lea.hbm %s1587_s0, 256  ;;  %p1155_p4 = scmp.lt.u32.totalorder %s1463_s24, %s1587_s0 }
  0x4f   : > { %p1152_p0 = pnand %p1151_p12, %p1150_p11  ;;  %p1156_p13 = scmp.lt.u32.totalorder %s1154_s30, %s1149_s21 }
  0x50   : > { %p1158_p10 = scmp.lt.u32.totalorder %s1149_s21, %s1463_s24 }
  0x51   : > { %p1153_p1 = pneg %p1152_p0  ;;  %p1157_p6 = por %p1156_p13, %p1155_p4 }
  0x53   : > { %p1159_p3 = por %p1158_p10, %p1157_p6 }
  0x55   : > { %p1160_p5 = pnand %p1159_p3, %p1153_p1 }
  0x57   : > { %1163 = shalt.err (!%p1160_p5)
}
  0x58   : > { %s1164_s23 = scalar_lea.vmem %s1471_s12, 128  ;;  %s1273_s10 = smov [#allocation4]  }
  0x59   : > { %p1165_p9 = scmp.ne.s32.totalorder %s1471_s12, %s1164_s23  ;;  %s1169_s16 = sshll.u32 %s1273_s10, 4  ;;  %s1170_s16 = int_to_ptr.vmem [resolvable:$false] %s1169_s16 }
  0x5a   : > { %s1171_s18 = scalar_lea.vmem %s1170_s16, 256  ;;  %p1172_p7 = scmp.lt.s32.totalorder %s1471_s12, %s1170_s16 }
  0x5b   : > { %p1167_p11 = pnand %p1165_p9, %p1151_p12  ;;  %p1173_p4 = scmp.lt.s32.totalorder %s1171_s18, %s1164_s23 }
  0x5d   : > { %p1168_p0 = pneg %p1167_p11  ;;  %p1174_p13 = por %p1173_p4, %p1172_p7 }
  0x5f   : > { %p1175_p6 = pnand %p1174_p13, %p1168_p0 }
  0x61   : > { %1178 = shalt.err (!%p1175_p6)
}
  0x62   : > { %981 = dma.hbm_to_vmem [thread:$0]  (!%p1467_p2), %s1463_s24, 128, %s1471_s12, %s297_s19  }
  0x63   : > { %316 = sbr.rel (%p1370_p8) target bundleno = 900 (0x384), region = 48  ;;  %s1501_s21 = sand.u32 (!%p1370_p8), 1, %s1249_s25  }
  0x64   : > { %s894_s30 = sshll.u32 (!%p1370_p8), %s1501_s21, 3  ;;  %s319_s14 = scalar_lea.sflag (!%p1370_p8), [#allocation5], %s1501_s21 }
  0x65   : > { %s322_s15 = scalar_lea.vmem (!%p1370_p8), [#allocation4], %s894_s30  ;;  %p1611_p7 = scmp.ne.s32.totalorder (!%p1370_p8), %s1604_s11, 0 }
  0x6a   : > { %1232 = dma.done.wait (%p1611_p7), %s319_s14, 128  }
  0x6b   : > { %1234 = vsyncadd (%p1611_p7), %s319_s14, 4294967168  ;;  %p1612_p2 = scmp.ne.s32.totalorder %s1602_s9, 0 }
  0x6d   : > { %1236 = dma.done.wait (%p1612_p2), [#allocation8], 4096  }
  0x6e   : > { %1238 = vsyncadd (%p1612_p2), [#allocation8], 4294963200  ;;  %v1515_v0 = vld [vmem:[%s322_s15] sm:$0xff]  ;;  %v1047_v1 = vld [vmem:[#allocation7 + $0x4] ss:$8 sps:$4 sm:$0xff]   ;;  %v1274_v21 = vmov 0   ;;  %v428_v49 = vlaneseq }
  0x6f   : > { %378 = vadd.xlane.f32.xlu0 %v1515_v0  ;;  %518 = vmatprep.subr.bf16.mxu0 %v1047_v1  ;;  %v1049_v6 = vld [vmem:[#allocation7] ss:$8 sps:$4 sm:$0xff]   ;;  %v1050_v7 = vld [vmem:[#allocation7 + $0x14] ss:$8 sps:$4 sm:$0xff]   ;;  %v1052_v8 = vld [vmem:[#allocation7 + $0x10] ss:$8 sps:$4 sm:$0xff]  }
  0x70   : > { %519 = vmatpush1.bf16.msra.mxu0 %v1049_v6  ;;  %v1053_v9 = vld [vmem:[#allocation7 + $0x24] ss:$8 sps:$4 sm:$0xff]   ;;  %v1055_v10 = vld [vmem:[#allocation7 + $0x20] ss:$8 sps:$4 sm:$0xff]   ;;  %v1056_v11 = vld [vmem:[#allocation7 + $0x34] ss:$8 sps:$4 sm:$0xff]   ;;  %550 = vmatprep.mubr.bf16.mxu0 %v1274_v21 }
  0x71   : > { %520 = vmatprep.subr.bf16.mxu0 %v1050_v7  ;;  %v1058_v12 = vld [vmem:[#allocation7 + $0x30] ss:$8 sps:$4 sm:$0xff]   ;;  %v1059_v13 = vld [vmem:[#allocation7 + $0x44] ss:$8 sps:$4 sm:$0xff]   ;;  %v1061_v14 = vld [vmem:[#allocation7 + $0x40] ss:$8 sps:$4 sm:$0xff]  }
  0x72   : > { %v1062_v15 = vld [vmem:[#allocation7 + $0x54] ss:$8 sps:$4 sm:$0xff]   ;;  %v1064_v16 = vld [vmem:[#allocation7 + $0x50] ss:$8 sps:$4 sm:$0xff]   ;;  %v1065_v17 = vld [vmem:[#allocation7 + $0x64] ss:$8 sps:$4 sm:$0xff]  }
  0x73   : > { %v1067_v18 = vld [vmem:[#allocation7 + $0x60] ss:$8 sps:$4 sm:$0xff]   ;;  %v1068_v19 = vld [vmem:[#allocation7 + $0x74] ss:$8 sps:$4 sm:$0xff]   ;;  %v1070_v20 = vld [vmem:[#allocation7 + $0x70] ss:$8 sps:$4 sm:$0xff]  }
  0x74   : > { %521 = vmatpush1.bf16.msra.mxu0 %v1052_v8  ;;  %v1071_v22 = vld [vmem:[#allocation9 + $0x40] sm:$0xff]   ;;  %v1073_v24 = vld [vmem:[#allocation9 + $0x48] sm:$0xff]   ;;  %v1075_v37 = vld [vmem:[#allocation9 + $0x50] sm:$0xff]   ;;  %v429_v50 = vshrl.u32 %v428_v49, 7  ;;  %s934_s10 = sshll.u32 %s1257_s27, 7  ;;  %s364_s16 = scalar_lea.vmem [#allocation10], %s894_s30 }
  0x75   : > { %522 = vmatprep.subr.bf16.mxu0 %v1053_v9  ;;  %v1072_v23 = vld [vmem:[#allocation9] sm:$0xff]   ;;  %937 = vmatprep.subr.bf16.mxu1 %v1071_v22  ;;  %v1074_v25 = vld [vmem:[#allocation9 + $0x8] sm:$0xff]   ;;  %v1076_v38 = vld [vmem:[#allocation9 + $0x10] sm:$0xff]   ;;  %s771_s18 = sshll.u32 %s364_s16, 4  ;;  %s1538_s9 = scalar_lea.hbm %s1594_s7, %s934_s10  ;;  %s1540_s18 = int_to_ptr.vmem [resolvable:$true] %s771_s18 }
  0x76   : > { %938 = vmatpush3.bf16.msra.mxu1 %v1072_v23  ;;  %v898_v30 = vld [vmem:[%s1588_s1] ss:$0 sm:$0xff]  ;;  %v1077_v39 = vld [vmem:[#allocation9 + $0x58] sm:$0xff]   ;;  %v1079_v41 = vld [vmem:[#allocation9 + $0x60] sm:$0xff]   ;;  %v430_v51 = vsub.s32 0, %v429_v50  ;;  %v434_v53 = vsub.s32 1, %v429_v50 }
  0x77   : > { %939 = vmatprep.subr.bf16.mxu1 %v1073_v24  ;;  %v899_v32 = vld [vmem:[%s1589_s2] ss:$0 sm:$0xff]  ;;  %v1078_v40 = vld [vmem:[#allocation9 + $0x18] sm:$0xff]   ;;  %v1080_v42 = vld [vmem:[#allocation9 + $0x20] sm:$0xff]   ;;  %s758_s11 = scalar_lea.sflag [#allocation6], %s1501_s21  ;;  %s1179_s13 = scalar_lea.vmem %s1540_s18, 128 }
  0x78   : > { %523 = vmatpush1.bf16.msra.mxu0 %v1055_v10  ;;  %v1081_v43 = vld [vmem:[#allocation9 + $0x68] sm:$0xff]   ;;  %v1083_v45 = vld [vmem:[#allocation9 + $0x70] sm:$0xff]   ;;  %v1085_v47 = vld [vmem:[#allocation9 + $0x78] sm:$0xff]   ;;  %p1180_p8 = scmp.ne.s32.totalorder %s1540_s18, %s1179_s13  ;;  %p1613_p12 = scmp.ne.s32.totalorder %s1609_s22, 0 }
  0x79   : > { %524 = vmatprep.subr.bf16.mxu0 %v1056_v11  ;;  %v1082_v44 = vld [vmem:[#allocation9 + $0x28] sm:$0xff]   ;;  %v1084_v46 = vld [vmem:[#allocation9 + $0x30] sm:$0xff]   ;;  %v1086_v48 = vld [vmem:[#allocation9 + $0x38] sm:$0xff]   ;;  %s1275_s27 = smov [#allocation10]  }
  0x7a   : > { %940 = vmatpush3.bf16.msra.mxu1 %v1074_v25  ;;  %v426_v52 = vld [vmem:[%s1591_s4] sm:$0x3]  ;;  %p1181_p1 = pnand %p1180_p8, %p1613_p12  ;;  %s1183_s30 = sshll.u32 %s1275_s27, 4  ;;  %s1184_s30 = int_to_ptr.vmem [resolvable:$false] %s1183_s30 }
  0x7b   : > { %941 = vmatprep.subr.bf16.mxu1 %v1075_v37  ;;  %v431_v54 = vrot.slane %v426_v52, %v430_v51  ;;  %v435_v55 = vrot.slane %v426_v52, %v434_v53  ;;  %s1185_s24 = scalar_lea.vmem %s1184_s30, 256  ;;  %p1186_p3 = scmp.lt.s32.totalorder %s1540_s18, %s1184_s30 }
  0x7c   : > { %525 = vmatpush1.bf16.msra.mxu0 %v1058_v12  ;;  %p1182_p10 = pneg %p1181_p1  ;;  %p1187_p5 = scmp.lt.s32.totalorder %s1185_s24, %s1179_s13 }
  0x7d   : > { %526 = vmatprep.subr.bf16.mxu0 %v1059_v13  ;;  %v932_v13 = vld [vmem:[%s1593_s6] ss:$0 sm:$0xff] }
  0x7e   : > { %942 = vmatpush3.bf16.msra.mxu1 %v1076_v38  ;;  %p1188_p9 = por %p1187_p5, %p1186_p3 }
  0x7f   : > { %943 = vmatprep.subr.bf16.mxu1 %v1077_v39 }
  0x80   : > { %527 = vmatpush1.bf16.msra.mxu0 %v1061_v14  ;;  %p1189_p11 = pnand %p1188_p9, %p1182_p10 }
  0x81   : > { %528 = vmatprep.subr.bf16.mxu0 %v1062_v15 }
  0x82   : > { %944 = vmatpush3.bf16.msra.mxu1 %v1078_v40 }
  0x83   : > { %945 = vmatprep.subr.bf16.mxu1 %v1079_v41 }
  0x84   : > { %529 = vmatpush1.bf16.msra.mxu0 %v1064_v16 }
  0x85   : > { %530 = vmatprep.subr.bf16.mxu0 %v1065_v17 }
  0x86   : > { %946 = vmatpush3.bf16.msra.mxu1 %v1080_v42 }
  0x87   : > { %947 = vmatprep.subr.bf16.mxu1 %v1081_v43 }
  0x88   : > { %531 = vmatpush1.bf16.msra.mxu0 %v1067_v18 }
  0x89   : > { %532 = vmatprep.subr.bf16.mxu0 %v1068_v19 }
  0x8a   : > { %948 = vmatpush3.bf16.msra.mxu1 %v1082_v44 }
  0x8b   : > { %949 = vmatprep.subr.bf16.mxu1 %v1083_v45 }
  0x8c   : > { %533 = vmatpush1.bf16.msra.mxu0 %v1070_v20 }
  0x8e   : > { %950 = vmatpush3.bf16.msra.mxu1 %v1084_v46 }
  0x8f   : > { %951 = vmatprep.subr.bf16.mxu1 %v1085_v47 }
  0x92   : > { %952 = vmatpush3.bf16.msra.mxu1 %v1086_v48 }
  0xfc   : > { %v379_v2 = vpop.xlane.xlu0 %378 }
  0xfd   : > { %v381_v3 = vmul.f32 0.0078125, %v379_v2 }
  0xff   : > { %v382_v4 = vsub.f32 %v1515_v0, %v381_v3 }
 0x101   : > { %v383_v5 = vmul.f32 %v382_v4, %v382_v4 }
 0x103   : > { %384 = vadd.xlane.f32.xlu0 %v383_v5 }
 0x190   : > { %v385_v26 = vpop.xlane.xlu0 %384 }
 0x191   : > { %v386_v27 = vmul.f32 0.0078125, %v385_v26 }
 0x193   : > { %v387_v28 = vadd.f32 1e-05, %v386_v27 }
 0x195   : > { %1087 = vrsqrt.f32 %v387_v28 }
 0x19f   : > { %v1088_v29 = vpop.eup %1087 }
 0x1a0   : > { %v389_v31 = vmul.f32 %v1088_v29, %v382_v4 }
 0x1a2   : > { %v397_v33 = vmul.f32 %v898_v30, %v389_v31 }
 0x1a4   : > { %v405_v34 = vadd.f32 %v899_v32, %v397_v33 }
 0x1a6   : > { %v406_v35 = vpack.c.bf16 %v405_v34, %v405_v34 }
 0x1a8   : > { %407 = vst [vmem:[#allocation2] sm:$0xf] %v406_v35 }
 0x1af   : > { %v409_v36 = vld [vmem:[#allocation2] sm:$0xf] }
 0x1b0   : > { %551 = vmatmul.mubr.bf16.vlgmr.msra.gmra.mrb[0].mxu0 %v409_v36 }
 0x283   : > { %v552_v56 = vpop.f32.mrb[0].mxu0 }
 0x284   : > { %v553_v57 = vadd.f32 %v552_v56, %v431_v54  ;;  %v554_v58 = vpop.f32.mrb[1].mxu0 }
 0x285   : > { %v555_v59 = vadd.f32 %v554_v58, %v435_v55  ;;  %v556_v60 = vpop.f32.mrb[2].mxu0 }
 0x286   : > { %v561_v61 = vmul.f32 0.70710677, %v553_v57  ;;  %v557_v62 = vpop.f32.mrb[3].mxu0  ;;  %v559_v3 = vmul.f32 0.5, %v553_v57 }
 0x287   : > { %v562_v63 = vmul.f32 0.70710677, %v555_v59  ;;  %v560_v5 = vmul.f32 0.5, %v555_v59 }
 0x288   : > { %1089 = verf.f32 %v561_v61 }
 0x289   : > { %1091 = verf.f32 %v562_v63 }
 0x292   : > { %v1090_v1 = vpop.eup %1089 }
 0x293   : > { %v1092_v2 = vpop.eup %1091  ;;  %v565_v4 = vadd.f32 1.0, %v1090_v1 }
 0x294   : > { %v566_v6 = vadd.f32 1.0, %v1092_v2 }
 0x295   : > { %v567_v7 = vmul.f32 %v565_v4, %v559_v3 }
 0x296   : > { %v568_v8 = vmul.f32 %v566_v6, %v560_v5 }
 0x297   : > { %v570_v10 = vpack.c.bf16 %v567_v7, %v567_v7 }
 0x298   : > { %v571_v9 = vpack.c.bf16 %v568_v8, %v568_v8 }
 0x29a   : > { %732 = vmatprep.mubr.bf16.mxu1 %v571_v9 }
 0x29b   : > { %733 = vmatmul.mubr.bf16.vlgmr.msra.gmra.mrb[0].mxu1 %v570_v10 }
 0x36e   : > { %v953_v11 = vpop.f32.mrb[0].mxu1 }
 0x36f   : > { %v954_v12 = vpop.f32.mrb[1].mxu1 }
 0x370   : > { %v955_v14 = vadd.f32 %v954_v12, %v953_v11  ;;  %v956_v15 = vpop.f32.mrb[2].mxu1 }
 0x371   : > { %v957_v16 = vpop.f32.mrb[3].mxu1 }
 0x372   : > { %v753_v17 = vadd.f32 %v955_v14, %v932_v13 }
 0x374   : > { %v755_v18 = vadd.f32 %v753_v17, %v1515_v0 }
 0x376   : > { %756 = vst [vmem:[%s364_s16] sm:$0xff] %v755_v18 }
 0x377   : > { %1192 = shalt.err (!%p1189_p11)
}
 0x378   : > { %s1193_s21 = scalar_lea.hbm %s1538_s9, 128  ;;  %s1197_s19 = scalar_lea.hbm %s1594_s7, 256 }
 0x379   : > { %p1194_p0 = scmp.ne.s32.totalorder %s1538_s9, %s1193_s21  ;;  %p1198_p6 = scmp.lt.u32.totalorder %s1538_s9, %s1594_s7 }
 0x37a   : > { %p1199_p7 = scmp.lt.u32.totalorder %s1197_s19, %s1193_s21  ;;  %p1201_p8 = scmp.lt.u32.totalorder %s1193_s21, %s1538_s9 }
 0x37b   : > { %p1195_p4 = pnand %p1194_p0, %p1613_p12 }
 0x37c   : > { %p1200_p2 = por %p1199_p7, %p1198_p6 }
 0x37d   : > { %p1196_p13 = pneg %p1195_p4 }
 0x37e   : > { %p1202_p1 = por %p1201_p8, %p1200_p2 }
 0x380   : > { %p1203_p10 = pnand %p1202_p1, %p1196_p13 }
 0x382   : > { %1206 = shalt.err (!%p1203_p10)
}
 0x383   : > { %969 = dma.vmem_to_hbm [thread:$0]  (%p1613_p12), %s1540_s18, 128, %s1538_s9, %s758_s11  }
 0x384 PF: > { %s1614_s16 = sld [smem:[#allocation14_spill]]  ;;  %s1615_s14 = sld [smem:[#allocation15_spill]] }
 0x385   : > { %p1617_p5 = scmp.ge.s32.totalorder %s1265_s29, 2 }
 0x38a   : > { %s783_s15 = sand.u32 1, %s1614_s16   ;;  %p1616_p3 = scmp.ne.s32.totalorder %s1615_s14, 0 }
 0x38b   : > { %s784_s13 = scalar_lea.sflag [#allocation6], %s783_s15 }
 0x38c   : > { %p983_p9 = pnand %p1617_p5, %p1616_p3 }
 0x38e   : > { %1240 = dma.done.wait (!%p983_p9), %s784_s13, 128  }
 0x38f   : > { %1242 = vsyncadd (!%p983_p9), %s784_s13, 4294967168  ;;  %s24_s29 = sadd.s32 1, %s1265_s29   ;;  %s1618_s24 = smov %s1249_s25 }
 0x390   : > { %p21_p11 = scmp.ge.s32.totalorder %s24_s29, 4   ;;  %s1619_s25 = smov %s1253_s26 }
 0x391   : > { %s1620_s26 = smov %s1458_s8  ;;  %s1621_s27 = smov %s1261_s28 }
 0x392   : > { %s1622_s28 = smov %s1624_s20  ;;  %23 = sbr.rel (!%p21_p11) target bundleno = 7 (0x7), region = 114 }
 0x399   :  { %789 = vsyncpa [#allocation5], 1 }
 0x39a   :  { %791 = vsyncpa [#allocation5 + $0x1], 1 }
 0x39b   :  { %792 = vsyncpa [#allocation8], 1 }
 0x39c   :  { %793 = vsyncpa [#allocation6], 1 }
 0x39d   :  { %795 = vsyncpa [#allocation6 + $0x1], 1 }

</bundles_post_ra>
